<compile_context>
chip_gen: v6e
topology: v6e:2x2x1
jax: 0.10.0
libtpu: 0.0.40
codegen_flags: <defaults>
</compile_context>

<pallas_src>
import functools

import jax
import jax.numpy as jnp
from jax import lax
from jax.experimental import pallas as pl
from jax.experimental.pallas import tpu as pltpu


def mha_kernel(q_ref, k_ref, v_ref, bias_ref,
               wq_ref, bq_ref, wk_ref, bk_ref, wv_ref, bv_ref,
               wo_ref, bo_ref, o_ref,
               acc_ref, kh_ref, vh_ref,
               *, scale, group_size, head_dim):
    qi = pl.program_id(1)
    g = pl.program_id(2)
    f32 = jnp.float32
    cd = kh_ref.dtype                       # compute dtype (bf16 or f32)

    # (1) First query tile of each batch element: project this head group's
    #     K and V into persistent VMEM scratch, reused by every query tile.
    @pl.when(qi == 0)
    def _():
        kh = jnp.dot(k_ref[0], wk_ref[0],
                     preferred_element_type=f32) + bk_ref[0].astype(f32)
        vh = jnp.dot(v_ref[0], wv_ref[0],
                     preferred_element_type=f32) + bv_ref[0].astype(f32)
        kh_ref[g] = kh.astype(cd)           # (S, G*dk)
        vh_ref[g] = vh.astype(cd)

    # (2) Q projection for this (query tile, head group): (tq, G*dk).
    qh = jnp.dot(q_ref[0], wq_ref[0],
                 preferred_element_type=f32) + bq_ref[0].astype(f32)
    qh = (qh * scale).astype(cd)

    kh = kh_ref[g]                          # (S, G*dk)
    vh = vh_ref[g]                          # (S, G*dk)

    # (3) Per-head attention inside the group (dk-wide contractions).
    ctx_parts = []
    for hh in range(group_size):
        lo, hi = hh * head_dim, (hh + 1) * head_dim
        s = lax.dot_general(qh[:, lo:hi], kh[:, lo:hi],
                            dimension_numbers=(((1,), (1,)), ((), ())),
                            preferred_element_type=f32)          # (tq, S)
        s = s + bias_ref[0, hh].astype(f32)
        m = jnp.maximum(jnp.max(s, axis=-1, keepdims=True), -1e30)
        p = jnp.exp(s - m)
        denom = jnp.maximum(jnp.sum(p, axis=-1, keepdims=True), 1e-30)
        ctx = jnp.dot(p.astype(cd), vh[:, lo:hi],
                      preferred_element_type=f32)                 # (tq, dk)
        # Normalize AFTER the PV matmul (tq*dk multiplies instead of tq*S).
        ctx = ctx * pl.reciprocal(denom, approx=True)
        ctx_parts.append(ctx.astype(cd))
    ctx_g = jnp.concatenate(ctx_parts, axis=-1)                   # (tq, G*dk)

    # (4) This group's contribution to the output projection (K dim = G*dk).
    part = jnp.dot(ctx_g, wo_ref[0], preferred_element_type=f32)  # (tq, H)

    @pl.when(g == 0)
    def _():
        acc_ref[...] = jnp.zeros_like(acc_ref)

    acc_ref[...] += part

    @pl.when(g == pl.num_programs(2) - 1)
    def _():
        o_ref[0] = (acc_ref[...] + bo_ref[...].astype(f32)).astype(o_ref.dtype)


def _choose_q_tile(S, target=256):
    """Largest multiple-of-8 divisor of S that is <= target (else S)."""
    if S <= target:
        return S
    best = S
    for t in range(8, target + 1, 8):
        if S % t == 0:
            best = t
    return best


def _choose_group_size(num_heads, dk, target=256):
    """Smallest divisor G of num_heads with G*dk >= target (else num_heads)."""
    for cand in range(1, num_heads + 1):
        if num_heads % cand == 0 and cand * dk >= target:
            return cand
    return num_heads


def _vmem_limit_bytes(S, H, dk, G, NG, tq, compute_dtype, out_dtype):
    cb = jnp.dtype(compute_dtype).itemsize
    ob = jnp.dtype(out_dtype).itemsize

    def pad(r, c, b):  # pad to (8, 128) vreg tiles
        return (-(-r // 8) * 8) * (-(-c // 128) * 128) * b

    gdk = G * dk
    blocks = (pad(tq, H, cb)                        # q
              + 2 * pad(S, H, cb)                   # k, v
              + G * pad(tq, S, cb)                  # bias
              + 3 * pad(H, gdk, cb)                 # wq, wk, wv
              + pad(gdk, H, cb)                     # wo
              + 3 * pad(1, gdk, cb) + pad(1, H, cb) # bq/bk/bv, bo
              + pad(tq, H, ob))                     # out
    scratch = pad(tq, H, 4) + 2 * NG * pad(S, gdk, cb)
    live = 2 * pad(tq, S, 4) + 2 * pad(tq, gdk, 4) + pad(tq, H, 4)
    request = 2 * blocks + scratch + live + (4 << 20)

    try:
        cap = pltpu.get_tpu_info().vmem_capacity_bytes
    except Exception:
        cap = 64 << 20
    ceiling = (cap * 7) // 8                        # leave compiler headroom
    return int(min(max(request, 32 << 20), ceiling))


def multi_head_attention(q, k, v, attn_bias, params, num_heads,
                         compute_dtype=jnp.bfloat16,
                         q_tile=None, group_size=None):
    B, S, H = q.shape
    dk = H // num_heads
    scale = dk ** (-0.5)

    tq = _choose_q_tile(S) if q_tile is None else q_tile
    G = _choose_group_size(num_heads, dk) if group_size is None else group_size
    NQ = S // tq
    NG = num_heads // G
    gdk = G * dk
    out_dtype = q.dtype
    cd = compute_dtype

    # Repack Linear parameters head-group-major once, in the wrapper, and
    # cast everything the kernel streams to the compute dtype (bf16 default).
    wq_h = params['wq'].reshape(H, NG, gdk).transpose(1, 0, 2).astype(cd)
    wk_h = params['wk'].reshape(H, NG, gdk).transpose(1, 0, 2).astype(cd)
    wv_h = params['wv'].reshape(H, NG, gdk).transpose(1, 0, 2).astype(cd)
    bq_h = params['bq'].reshape(1, NG, gdk).transpose(1, 0, 2).astype(cd)
    bk_h = params['bk'].reshape(1, NG, gdk).transpose(1, 0, 2).astype(cd)
    bv_h = params['bv'].reshape(1, NG, gdk).transpose(1, 0, 2).astype(cd)
    wo_h = params['wo'].reshape(NG, gdk, H).astype(cd)
    bo = params['bo'].astype(cd)
    q_c = q.astype(cd)
    k_c = k.astype(cd)
    v_c = v.astype(cd)
    bias_c = attn_bias.astype(cd)

    kernel = functools.partial(mha_kernel, scale=scale,
                               group_size=G, head_dim=dk)

    q_spec = pl.BlockSpec((1, tq, H), lambda b, i, g: (b, i, 0))
    kv_spec = pl.BlockSpec((1, S, H), lambda b, i, g: (b, 0, 0))
    bias_spec = pl.BlockSpec((1, G, tq, S), lambda b, i, g: (b, g, i, 0))
    win_spec = pl.BlockSpec((1, H, gdk), lambda b, i, g: (g, 0, 0))
    bin_spec = pl.BlockSpec((1, 1, gdk), lambda b, i, g: (g, 0, 0))
    wo_spec = pl.BlockSpec((1, gdk, H), lambda b, i, g: (g, 0, 0))
    bo_spec = pl.BlockSpec((1, H), lambda b, i, g: (0, 0))
    out_spec = pl.BlockSpec((1, tq, H), lambda b, i, g: (b, i, 0))

    cb = jnp.dtype(cd).itemsize
    flops = int(2 * B * S * H * H * 3                      # input projections
                + 2 * B * num_heads * S * S * dk * 2       # QK^T and PV
                + 2 * B * S * H * H)                       # output projection
    transcendentals = int(B * num_heads * S * S)
    bytes_accessed = int(cb * (3 * B * S * H + B * num_heads * S * S
                               + NQ * NG * 4 * H * gdk + 4 * H)
                         + jnp.dtype(out_dtype).itemsize * B * S * H)

    return pl.pallas_call(
        kernel,
        out_shape=jax.ShapeDtypeStruct((B, S, H), out_dtype),
        grid=(B, NQ, NG),
        in_specs=[q_spec, kv_spec, kv_spec, bias_spec,
                  win_spec, bin_spec, win_spec, bin_spec,
                  win_spec, bin_spec, wo_spec, bo_spec],
        out_specs=out_spec,
        scratch_shapes=[pltpu.VMEM((tq, H), jnp.float32),       # out-proj acc
                        pltpu.VMEM((NG, S, gdk), cd),           # K_h cache
                        pltpu.VMEM((NG, S, gdk), cd)],          # V_h cache
        compiler_params=pltpu.CompilerParams(
            dimension_semantics=("parallel", "arbitrary", "arbitrary"),
            vmem_limit_bytes=_vmem_limit_bytes(S, H, dk, G, NG, tq, cd,
                                               out_dtype)),
        cost_estimate=pl.CostEstimate(flops=flops,
                                      transcendentals=transcendentals,
                                      bytes_accessed=bytes_accessed),
    )(q_c, k_c, v_c, bias_c,
      wq_h, bq_h, wk_h, bk_h, wv_h, bv_h, wo_h, bo)


def reference_mha(q, k, v, attn_bias, params, num_heads):
    """Pure-JAX reference mirroring the PyTorch forward (dropout = identity)."""
    B, S, H = q.shape
    dk = H // num_heads
    scale = dk ** (-0.5)
    qp = (q @ params['wq'] + params['bq']).reshape(B, S, num_heads, dk)
    kp = (k @ params['wk'] + params['bk']).reshape(B, S, num_heads, dk)
    vp = (v @ params['wv'] + params['bv']).reshape(B, S, num_heads, dk)
    qp = jnp.transpose(qp, (0, 2, 1, 3)) * scale      # (B, nh, S, dk)
    kp = jnp.transpose(kp, (0, 2, 3, 1))              # (B, nh, dk, S)
    vp = jnp.transpose(vp, (0, 2, 1, 3))              # (B, nh, S, dk)
    x = qp @ kp + attn_bias
    x = jax.nn.softmax(x, axis=3)
    x = x @ vp                                        # (B, nh, S, dk)
    x = jnp.transpose(x, (0, 2, 1, 3)).reshape(B, S, H)
    return x @ params['wo'] + params['bo']


def init_params(key, hidden_size):
    """Deterministic Linear-layer init (uniform +/- 1/sqrt(fan_in), like torch)."""
    bound = 1.0 / (hidden_size ** 0.5)
    keys = jax.random.split(key, 8)

    def u(k, shape):
        return jax.random.uniform(k, shape, jnp.float32, -bound, bound)

    return {
        'wq': u(keys[0], (hidden_size, hidden_size)),
        'bq': u(keys[1], (1, hidden_size)),
        'wk': u(keys[2], (hidden_size, hidden_size)),
        'bk': u(keys[3], (1, hidden_size)),
        'wv': u(keys[4], (hidden_size, hidden_size)),
        'bv': u(keys[5], (1, hidden_size)),
        'wo': u(keys[6], (hidden_size, hidden_size)),
        'bo': u(keys[7], (1, hidden_size)),
    }


if __name__ == "__main__":
    B, S, H, NH = 2, 8, 32, 4

    root = jax.random.PRNGKey(0)
    kq, kk, kv, kb, kp = jax.random.split(root, 5)

    q = jax.random.normal(kq, (B, S, H), jnp.float32)
    k = jax.random.normal(kk, (B, S, H), jnp.float32)
    v = jax.random.normal(kv, (B, S, H), jnp.float32)
    attn_bias = 0.1 * jax.random.normal(kb, (B, NH, S, S), jnp.float32)
    params = init_params(kp, H)

    ref = reference_mha(q, k, v, attn_bias, params, NH)

    # f32-operand path: tight check (only approx-reciprocal deviation).
    out_f32 = multi_head_attention(q, k, v, attn_bias, params, NH,
                                   compute_dtype=jnp.float32)
    out_f32 = jax.block_until_ready(out_f32)
    assert out_f32.shape == (B, S, H)
    assert jnp.allclose(out_f32, ref, atol=1e-2, rtol=1e-2), "f32 mismatch"

    # bf16-operand (MXU / HBM fast path) with f32 accumulation: looser check.
    out_bf16 = multi_head_attention(q, k, v, attn_bias, params, NH,
                                    compute_dtype=jnp.bfloat16)
    out_bf16 = jax.block_until_ready(out_bf16)
    assert out_bf16.shape == (B, S, H)
    assert jnp.allclose(out_bf16, ref, atol=5e-2, rtol=5e-2), "bf16 mismatch"

    print("KERNEL_OK")
</pallas_src>

<mosaic_0001>
module attributes {stable_mosaic.version = 11 : i64} {
  func.func @mha_kernel(%arg0: i32, %arg1: i32, %arg2: i32, %arg3: memref<1x8x32xf32, #tpu.memory_space<vmem>>, %arg4: memref<1x8x32xf32, #tpu.memory_space<vmem>>, %arg5: memref<1x8x32xf32, #tpu.memory_space<vmem>>, %arg6: memref<1x4x8x8xf32, #tpu.memory_space<vmem>>, %arg7: memref<1x32x32xf32, #tpu.memory_space<vmem>>, %arg8: memref<1x1x32xf32, #tpu.memory_space<vmem>>, %arg9: memref<1x32x32xf32, #tpu.memory_space<vmem>>, %arg10: memref<1x1x32xf32, #tpu.memory_space<vmem>>, %arg11: memref<1x32x32xf32, #tpu.memory_space<vmem>>, %arg12: memref<1x1x32xf32, #tpu.memory_space<vmem>>, %arg13: memref<1x32x32xf32, #tpu.memory_space<vmem>>, %arg14: memref<1x32xf32, #tpu.memory_space<vmem>>, %arg15: memref<1x8x32xf32, #tpu.memory_space<vmem>>, %arg16: memref<8x32xf32, #tpu.memory_space<vmem>>, %arg17: memref<1x8x32xf32, #tpu.memory_space<vmem>>, %arg18: memref<1x8x32xf32, #tpu.memory_space<vmem>>) attributes {dimension_semantics = [#tpu.dimension_semantics<parallel>, #tpu.dimension_semantics<arbitrary>, #tpu.dimension_semantics<arbitrary>], iteration_bounds = array<i64: 2, 1, 1>, scalar_prefetch = 0 : i64, scratch_operands = 3 : i64, tpu.core_type = #tpu.core_type<tc>, window_params = [{transform_indices = @transform_0, window_bounds = array<i64: 1, 8, 32>}, {transform_indices = @transform_1, window_bounds = array<i64: 1, 8, 32>}, {transform_indices = @transform_2, window_bounds = array<i64: 1, 8, 32>}, {transform_indices = @transform_3, window_bounds = array<i64: 1, 4, 8, 8>}, {transform_indices = @transform_4, window_bounds = array<i64: 1, 32, 32>}, {transform_indices = @transform_5, window_bounds = array<i64: 1, 1, 32>}, {transform_indices = @transform_6, window_bounds = array<i64: 1, 32, 32>}, {transform_indices = @transform_7, window_bounds = array<i64: 1, 1, 32>}, {transform_indices = @transform_8, window_bounds = array<i64: 1, 32, 32>}, {transform_indices = @transform_9, window_bounds = array<i64: 1, 1, 32>}, {transform_indices = @transform_10, window_bounds = array<i64: 1, 32, 32>}, {pipeline_mode = #tpu.pipeline_mode<synchronous>, transform_indices = @transform_11, window_bounds = array<i64: 1, 32>}, {transform_indices = @transform_12, window_bounds = array<i64: 1, 8, 32>}]} {
    %c0_i32 = arith.constant 0 : i32
    %0 = arith.cmpi eq, %arg1, %c0_i32 : i32
    %1 = arith.extui %0 : i1 to i32
    %c0_i32_0 = arith.constant 0 : i32
    %2 = arith.cmpi ne, %1, %c0_i32_0 : i32
    scf.if %2 {
      %c0_63 = arith.constant 0 : index
      %c0_64 = arith.constant 0 : index
      %c0_65 = arith.constant 0 : index
      %121 = vector.load %arg4[%c0_63, %c0_64, %c0_65] : memref<1x8x32xf32, #tpu.memory_space<vmem>>, vector<1x8x32xf32>
      %122 = vector.shape_cast %121 : vector<1x8x32xf32> to vector<8x32xf32>
      %c0_66 = arith.constant 0 : index
      %c0_67 = arith.constant 0 : index
      %c0_68 = arith.constant 0 : index
      %123 = vector.load %arg9[%c0_66, %c0_67, %c0_68] : memref<1x32x32xf32, #tpu.memory_space<vmem>>, vector<1x32x32xf32>
      %124 = vector.shape_cast %123 : vector<1x32x32xf32> to vector<32x32xf32>
      %cst_69 = arith.constant dense<0.000000e+00> : vector<8x32xf32>
      %125 = tpu.matmul %122, %124, %cst_69 {dimension_numbers = #tpu.dot_dimension_numbers<[1], [0], [0], [1], [0, 0, 1, 1], [], []>} : vector<8x32xf32>, vector<32x32xf32>, vector<8x32xf32> -> vector<8x32xf32>
      %c0_70 = arith.constant 0 : index
      %c0_71 = arith.constant 0 : index
      %c0_72 = arith.constant 0 : index
      %126 = vector.load %arg10[%c0_70, %c0_71, %c0_72] : memref<1x1x32xf32, #tpu.memory_space<vmem>>, vector<1x1x32xf32>
      %127 = vector.shape_cast %126 : vector<1x1x32xf32> to vector<1x32xf32>
      %128 = vector.broadcast %127 : vector<1x32xf32> to vector<8x32xf32>
      %129 = arith.addf %125, %128 : vector<8x32xf32>
      %c0_73 = arith.constant 0 : index
      %c0_74 = arith.constant 0 : index
      %c0_75 = arith.constant 0 : index
      %130 = vector.load %arg5[%c0_73, %c0_74, %c0_75] : memref<1x8x32xf32, #tpu.memory_space<vmem>>, vector<1x8x32xf32>
      %131 = vector.shape_cast %130 : vector<1x8x32xf32> to vector<8x32xf32>
      %c0_76 = arith.constant 0 : index
      %c0_77 = arith.constant 0 : index
      %c0_78 = arith.constant 0 : index
      %132 = vector.load %arg11[%c0_76, %c0_77, %c0_78] : memref<1x32x32xf32, #tpu.memory_space<vmem>>, vector<1x32x32xf32>
      %133 = vector.shape_cast %132 : vector<1x32x32xf32> to vector<32x32xf32>
      %cst_79 = arith.constant dense<0.000000e+00> : vector<8x32xf32>
      %134 = tpu.matmul %131, %133, %cst_79 {dimension_numbers = #tpu.dot_dimension_numbers<[1], [0], [0], [1], [0, 0, 1, 1], [], []>} : vector<8x32xf32>, vector<32x32xf32>, vector<8x32xf32> -> vector<8x32xf32>
      %c0_80 = arith.constant 0 : index
      %c0_81 = arith.constant 0 : index
      %c0_82 = arith.constant 0 : index
      %135 = vector.load %arg12[%c0_80, %c0_81, %c0_82] : memref<1x1x32xf32, #tpu.memory_space<vmem>>, vector<1x1x32xf32>
      %136 = vector.shape_cast %135 : vector<1x1x32xf32> to vector<1x32xf32>
      %137 = vector.broadcast %136 : vector<1x32xf32> to vector<8x32xf32>
      %138 = arith.addf %134, %137 : vector<8x32xf32>
      %139 = arith.index_cast %arg2 : i32 to index
      %c0_83 = arith.constant 0 : index
      %c0_84 = arith.constant 0 : index
      %140 = vector.load %arg17[%139, %c0_83, %c0_84] : memref<1x8x32xf32, #tpu.memory_space<vmem>>, vector<1x8x32xf32>
      %141 = vector.shape_cast %140 : vector<1x8x32xf32> to vector<8x32xf32>
      %142 = vector.shape_cast %129 : vector<8x32xf32> to vector<1x8x32xf32>
      tpu.vector_store %arg17[%139, %c0_83, %c0_84], %142 {strides = array<i32>} : memref<1x8x32xf32, #tpu.memory_space<vmem>>, vector<1x8x32xf32>,
      %143 = arith.index_cast %arg2 : i32 to index
      %c0_85 = arith.constant 0 : index
      %c0_86 = arith.constant 0 : index
      %144 = vector.load %arg18[%143, %c0_85, %c0_86] : memref<1x8x32xf32, #tpu.memory_space<vmem>>, vector<1x8x32xf32>
      %145 = vector.shape_cast %144 : vector<1x8x32xf32> to vector<8x32xf32>
      %146 = vector.shape_cast %138 : vector<8x32xf32> to vector<1x8x32xf32>
      tpu.vector_store %arg18[%143, %c0_85, %c0_86], %146 {strides = array<i32>} : memref<1x8x32xf32, #tpu.memory_space<vmem>>, vector<1x8x32xf32>,
    } else {
    }
    %c0 = arith.constant 0 : index
    %c0_1 = arith.constant 0 : index
    %c0_2 = arith.constant 0 : index
    %3 = vector.load %arg3[%c0, %c0_1, %c0_2] : memref<1x8x32xf32, #tpu.memory_space<vmem>>, vector<1x8x32xf32>
    %4 = vector.shape_cast %3 : vector<1x8x32xf32> to vector<8x32xf32>
    %c0_3 = arith.constant 0 : index
    %c0_4 = arith.constant 0 : index
    %c0_5 = arith.constant 0 : index
    %5 = vector.load %arg7[%c0_3, %c0_4, %c0_5] : memref<1x32x32xf32, #tpu.memory_space<vmem>>, vector<1x32x32xf32>
    %6 = vector.shape_cast %5 : vector<1x32x32xf32> to vector<32x32xf32>
    %cst = arith.constant dense<0.000000e+00> : vector<8x32xf32>
    %7 = tpu.matmul %4, %6, %cst {dimension_numbers = #tpu.dot_dimension_numbers<[1], [0], [0], [1], [0, 0, 1, 1], [], []>} : vector<8x32xf32>, vector<32x32xf32>, vector<8x32xf32> -> vector<8x32xf32>
    %c0_6 = arith.constant 0 : index
    %c0_7 = arith.constant 0 : index
    %c0_8 = arith.constant 0 : index
    %8 = vector.load %arg8[%c0_6, %c0_7, %c0_8] : memref<1x1x32xf32, #tpu.memory_space<vmem>>, vector<1x1x32xf32>
    %9 = vector.shape_cast %8 : vector<1x1x32xf32> to vector<1x32xf32>
    %10 = vector.broadcast %9 : vector<1x32xf32> to vector<8x32xf32>
    %11 = arith.addf %7, %10 : vector<8x32xf32>
    %cst_9 = arith.constant 0.353553385 : f32
    %12 = vector.broadcast %cst_9 : f32 to vector<8x32xf32>
    %13 = arith.mulf %11, %12 : vector<8x32xf32>
    %14 = arith.index_cast %arg2 : i32 to index
    %c0_10 = arith.constant 0 : index
    %c0_11 = arith.constant 0 : index
    %15 = vector.load %arg17[%14, %c0_10, %c0_11] : memref<1x8x32xf32, #tpu.memory_space<vmem>>, vector<1x8x32xf32>
    %16 = vector.shape_cast %15 : vector<1x8x32xf32> to vector<8x32xf32>
    %17 = arith.index_cast %arg2 : i32 to index
    %c0_12 = arith.constant 0 : index
    %c0_13 = arith.constant 0 : index
    %18 = vector.load %arg18[%17, %c0_12, %c0_13] : memref<1x8x32xf32, #tpu.memory_space<vmem>>, vector<1x8x32xf32>
    %19 = vector.shape_cast %18 : vector<1x8x32xf32> to vector<8x32xf32>
    %20 = vector.extract_strided_slice %13 {offsets = [0, 0], sizes = [8, 8], strides = [1, 1]} : vector<8x32xf32> to vector<8x8xf32>
    %21 = vector.extract_strided_slice %16 {offsets = [0, 0], sizes = [8, 8], strides = [1, 1]} : vector<8x32xf32> to vector<8x8xf32>
    %cst_14 = arith.constant dense<0.000000e+00> : vector<8x8xf32>
    %22 = tpu.matmul %20, %21, %cst_14 {dimension_numbers = #tpu.dot_dimension_numbers<[1], [1], [0], [0], [0, 0, 1, 0], [], []>} : vector<8x8xf32>, vector<8x8xf32>, vector<8x8xf32> -> vector<8x8xf32>
    %c0_15 = arith.constant 0 : index
    %c0_16 = arith.constant 0 : index
    %c0_17 = arith.constant 0 : index
    %c0_18 = arith.constant 0 : index
    %23 = vector.load %arg6[%c0_15, %c0_16, %c0_17, %c0_18] : memref<1x4x8x8xf32, #tpu.memory_space<vmem>>, vector<1x1x8x8xf32>
    %24 = vector.shape_cast %23 : vector<1x1x8x8xf32> to vector<8x8xf32>
    %25 = arith.addf %22, %24 : vector<8x8xf32>
    %cst_19 = arith.constant dense<0xFF800000> : vector<8xf32>
    %26 = vector.multi_reduction <maximumf>, %25, %cst_19 [1] : vector<8x8xf32> to vector<8xf32>
    %27 = vector.shape_cast %26 : vector<8xf32> to vector<8x1xf32>
    %cst_20 = arith.constant -1.000000e+30 : f32
    %28 = vector.broadcast %cst_20 : f32 to vector<8x1xf32>
    %29 = arith.maximumf %27, %28 : vector<8x1xf32>
    %30 = vector.broadcast %29 : vector<8x1xf32> to vector<8x8xf32>
    %31 = arith.subf %25, %30 : vector<8x8xf32>
    %32 = math.exp %31 : vector<8x8xf32>
    %cst_21 = arith.constant dense<0.000000e+00> : vector<8xf32>
    %33 = vector.multi_reduction <add>, %32, %cst_21 [1] : vector<8x8xf32> to vector<8xf32>
    %34 = vector.shape_cast %33 : vector<8xf32> to vector<8x1xf32>
    %cst_22 = arith.constant 1.000000e-30 : f32
    %35 = vector.broadcast %cst_22 : f32 to vector<8x1xf32>
    %36 = arith.maximumf %34, %35 : vector<8x1xf32>
    %37 = vector.extract_strided_slice %19 {offsets = [0, 0], sizes = [8, 8], strides = [1, 1]} : vector<8x32xf32> to vector<8x8xf32>
    %cst_23 = arith.constant dense<0.000000e+00> : vector<8x8xf32>
    %38 = tpu.matmul %32, %37, %cst_23 {dimension_numbers = #tpu.dot_dimension_numbers<[1], [0], [0], [1], [0, 0, 1, 1], [], []>} : vector<8x8xf32>, vector<8x8xf32>, vector<8x8xf32> -> vector<8x8xf32>
    %39 = tpu.reciprocal %36 {approx = true} : vector<8x1xf32> -> vector<8x1xf32>
    %40 = vector.broadcast %39 : vector<8x1xf32> to vector<8x8xf32>
    %41 = arith.mulf %38, %40 : vector<8x8xf32>
    %42 = vector.extract_strided_slice %13 {offsets = [0, 8], sizes = [8, 8], strides = [1, 1]} : vector<8x32xf32> to vector<8x8xf32>
    %43 = vector.extract_strided_slice %16 {offsets = [0, 8], sizes = [8, 8], strides = [1, 1]} : vector<8x32xf32> to vector<8x8xf32>
    %cst_24 = arith.constant dense<0.000000e+00> : vector<8x8xf32>
    %44 = tpu.matmul %42, %43, %cst_24 {dimension_numbers = #tpu.dot_dimension_numbers<[1], [1], [0], [0], [0, 0, 1, 0], [], []>} : vector<8x8xf32>, vector<8x8xf32>, vector<8x8xf32> -> vector<8x8xf32>
    %c0_25 = arith.constant 0 : index
    %c1 = arith.constant 1 : index
    %c0_26 = arith.constant 0 : index
    %c0_27 = arith.constant 0 : index
    %45 = vector.load %arg6[%c0_25, %c1, %c0_26, %c0_27] : memref<1x4x8x8xf32, #tpu.memory_space<vmem>>, vector<1x1x8x8xf32>
    %46 = vector.shape_cast %45 : vector<1x1x8x8xf32> to vector<8x8xf32>
    %47 = arith.addf %44, %46 : vector<8x8xf32>
    %cst_28 = arith.constant dense<0xFF800000> : vector<8xf32>
    %48 = vector.multi_reduction <maximumf>, %47, %cst_28 [1] : vector<8x8xf32> to vector<8xf32>
    %49 = vector.shape_cast %48 : vector<8xf32> to vector<8x1xf32>
    %cst_29 = arith.constant -1.000000e+30 : f32
    %50 = vector.broadcast %cst_29 : f32 to vector<8x1xf32>
    %51 = arith.maximumf %49, %50 : vector<8x1xf32>
    %52 = vector.broadcast %51 : vector<8x1xf32> to vector<8x8xf32>
    %53 = arith.subf %47, %52 : vector<8x8xf32>
    %54 = math.exp %53 : vector<8x8xf32>
    %cst_30 = arith.constant dense<0.000000e+00> : vector<8xf32>
    %55 = vector.multi_reduction <add>, %54, %cst_30 [1] : vector<8x8xf32> to vector<8xf32>
    %56 = vector.shape_cast %55 : vector<8xf32> to vector<8x1xf32>
    %cst_31 = arith.constant 1.000000e-30 : f32
    %57 = vector.broadcast %cst_31 : f32 to vector<8x1xf32>
    %58 = arith.maximumf %56, %57 : vector<8x1xf32>
    %59 = vector.extract_strided_slice %19 {offsets = [0, 8], sizes = [8, 8], strides = [1, 1]} : vector<8x32xf32> to vector<8x8xf32>
    %cst_32 = arith.constant dense<0.000000e+00> : vector<8x8xf32>
    %60 = tpu.matmul %54, %59, %cst_32 {dimension_numbers = #tpu.dot_dimension_numbers<[1], [0], [0], [1], [0, 0, 1, 1], [], []>} : vector<8x8xf32>, vector<8x8xf32>, vector<8x8xf32> -> vector<8x8xf32>
    %61 = tpu.reciprocal %58 {approx = true} : vector<8x1xf32> -> vector<8x1xf32>
    %62 = vector.broadcast %61 : vector<8x1xf32> to vector<8x8xf32>
    %63 = arith.mulf %60, %62 : vector<8x8xf32>
    %64 = vector.extract_strided_slice %13 {offsets = [0, 16], sizes = [8, 8], strides = [1, 1]} : vector<8x32xf32> to vector<8x8xf32>
    %65 = vector.extract_strided_slice %16 {offsets = [0, 16], sizes = [8, 8], strides = [1, 1]} : vector<8x32xf32> to vector<8x8xf32>
    %cst_33 = arith.constant dense<0.000000e+00> : vector<8x8xf32>
    %66 = tpu.matmul %64, %65, %cst_33 {dimension_numbers = #tpu.dot_dimension_numbers<[1], [1], [0], [0], [0, 0, 1, 0], [], []>} : vector<8x8xf32>, vector<8x8xf32>, vector<8x8xf32> -> vector<8x8xf32>
    %c0_34 = arith.constant 0 : index
    %c2 = arith.constant 2 : index
    %c0_35 = arith.constant 0 : index
    %c0_36 = arith.constant 0 : index
    %67 = vector.load %arg6[%c0_34, %c2, %c0_35, %c0_36] : memref<1x4x8x8xf32, #tpu.memory_space<vmem>>, vector<1x1x8x8xf32>
    %68 = vector.shape_cast %67 : vector<1x1x8x8xf32> to vector<8x8xf32>
    %69 = arith.addf %66, %68 : vector<8x8xf32>
    %cst_37 = arith.constant dense<0xFF800000> : vector<8xf32>
    %70 = vector.multi_reduction <maximumf>, %69, %cst_37 [1] : vector<8x8xf32> to vector<8xf32>
    %71 = vector.shape_cast %70 : vector<8xf32> to vector<8x1xf32>
    %cst_38 = arith.constant -1.000000e+30 : f32
    %72 = vector.broadcast %cst_38 : f32 to vector<8x1xf32>
    %73 = arith.maximumf %71, %72 : vector<8x1xf32>
    %74 = vector.broadcast %73 : vector<8x1xf32> to vector<8x8xf32>
    %75 = arith.subf %69, %74 : vector<8x8xf32>
    %76 = math.exp %75 : vector<8x8xf32>
    %cst_39 = arith.constant dense<0.000000e+00> : vector<8xf32>
    %77 = vector.multi_reduction <add>, %76, %cst_39 [1] : vector<8x8xf32> to vector<8xf32>
    %78 = vector.shape_cast %77 : vector<8xf32> to vector<8x1xf32>
    %cst_40 = arith.constant 1.000000e-30 : f32
    %79 = vector.broadcast %cst_40 : f32 to vector<8x1xf32>
    %80 = arith.maximumf %78, %79 : vector<8x1xf32>
    %81 = vector.extract_strided_slice %19 {offsets = [0, 16], sizes = [8, 8], strides = [1, 1]} : vector<8x32xf32> to vector<8x8xf32>
    %cst_41 = arith.constant dense<0.000000e+00> : vector<8x8xf32>
    %82 = tpu.matmul %76, %81, %cst_41 {dimension_numbers = #tpu.dot_dimension_numbers<[1], [0], [0], [1], [0, 0, 1, 1], [], []>} : vector<8x8xf32>, vector<8x8xf32>, vector<8x8xf32> -> vector<8x8xf32>
    %83 = tpu.reciprocal %80 {approx = true} : vector<8x1xf32> -> vector<8x1xf32>
    %84 = vector.broadcast %83 : vector<8x1xf32> to vector<8x8xf32>
    %85 = arith.mulf %82, %84 : vector<8x8xf32>
    %86 = vector.extract_strided_slice %13 {offsets = [0, 24], sizes = [8, 8], strides = [1, 1]} : vector<8x32xf32> to vector<8x8xf32>
    %87 = vector.extract_strided_slice %16 {offsets = [0, 24], sizes = [8, 8], strides = [1, 1]} : vector<8x32xf32> to vector<8x8xf32>
    %cst_42 = arith.constant dense<0.000000e+00> : vector<8x8xf32>
    %88 = tpu.matmul %86, %87, %cst_42 {dimension_numbers = #tpu.dot_dimension_numbers<[1], [1], [0], [0], [0, 0, 1, 0], [], []>} : vector<8x8xf32>, vector<8x8xf32>, vector<8x8xf32> -> vector<8x8xf32>
    %c0_43 = arith.constant 0 : index
    %c3 = arith.constant 3 : index
    %c0_44 = arith.constant 0 : index
    %c0_45 = arith.constant 0 : index
    %89 = vector.load %arg6[%c0_43, %c3, %c0_44, %c0_45] : memref<1x4x8x8xf32, #tpu.memory_space<vmem>>, vector<1x1x8x8xf32>
    %90 = vector.shape_cast %89 : vector<1x1x8x8xf32> to vector<8x8xf32>
    %91 = arith.addf %88, %90 : vector<8x8xf32>
    %cst_46 = arith.constant dense<0xFF800000> : vector<8xf32>
    %92 = vector.multi_reduction <maximumf>, %91, %cst_46 [1] : vector<8x8xf32> to vector<8xf32>
    %93 = vector.shape_cast %92 : vector<8xf32> to vector<8x1xf32>
    %cst_47 = arith.constant -1.000000e+30 : f32
    %94 = vector.broadcast %cst_47 : f32 to vector<8x1xf32>
    %95 = arith.maximumf %93, %94 : vector<8x1xf32>
    %96 = vector.broadcast %95 : vector<8x1xf32> to vector<8x8xf32>
    %97 = arith.subf %91, %96 : vector<8x8xf32>
    %98 = math.exp %97 : vector<8x8xf32>
    %cst_48 = arith.constant dense<0.000000e+00> : vector<8xf32>
    %99 = vector.multi_reduction <add>, %98, %cst_48 [1] : vector<8x8xf32> to vector<8xf32>
    %100 = vector.shape_cast %99 : vector<8xf32> to vector<8x1xf32>
    %cst_49 = arith.constant 1.000000e-30 : f32
    %101 = vector.broadcast %cst_49 : f32 to vector<8x1xf32>
    %102 = arith.maximumf %100, %101 : vector<8x1xf32>
    %103 = vector.extract_strided_slice %19 {offsets = [0, 24], sizes = [8, 8], strides = [1, 1]} : vector<8x32xf32> to vector<8x8xf32>
    %cst_50 = arith.constant dense<0.000000e+00> : vector<8x8xf32>
    %104 = tpu.matmul %98, %103, %cst_50 {dimension_numbers = #tpu.dot_dimension_numbers<[1], [0], [0], [1], [0, 0, 1, 1], [], []>} : vector<8x8xf32>, vector<8x8xf32>, vector<8x8xf32> -> vector<8x8xf32>
    %105 = tpu.reciprocal %102 {approx = true} : vector<8x1xf32> -> vector<8x1xf32>
    %106 = vector.broadcast %105 : vector<8x1xf32> to vector<8x8xf32>
    %107 = arith.mulf %104, %106 : vector<8x8xf32>
    %108 = tpu.concatenate %41, %63, %85, %107 in 1 : vector<8x8xf32>, vector<8x8xf32>, vector<8x8xf32>, vector<8x8xf32> -> vector<8x32xf32>
    %c0_51 = arith.constant 0 : index
    %c0_52 = arith.constant 0 : index
    %c0_53 = arith.constant 0 : index
    %109 = vector.load %arg13[%c0_51, %c0_52, %c0_53] : memref<1x32x32xf32, #tpu.memory_space<vmem>>, vector<1x32x32xf32>
    %110 = vector.shape_cast %109 : vector<1x32x32xf32> to vector<32x32xf32>
    %cst_54 = arith.constant dense<0.000000e+00> : vector<8x32xf32>
    %111 = tpu.matmul %108, %110, %cst_54 {dimension_numbers = #tpu.dot_dimension_numbers<[1], [0], [0], [1], [0, 0, 1, 1], [], []>} : vector<8x32xf32>, vector<32x32xf32>, vector<8x32xf32> -> vector<8x32xf32>
    %c0_i32_55 = arith.constant 0 : i32
    %112 = arith.cmpi eq, %arg2, %c0_i32_55 : i32
    %113 = arith.extui %112 : i1 to i32
    %c0_i32_56 = arith.constant 0 : i32
    %114 = arith.cmpi ne, %113, %c0_i32_56 : i32
    scf.if %114 {
      %cst_63 = arith.constant 0.000000e+00 : f32
      %121 = vector.broadcast %cst_63 : f32 to vector<8x32xf32>
      %c0_64 = arith.constant 0 : index
      %c0_65 = arith.constant 0 : index
      %122 = vector.load %arg16[%c0_64, %c0_65] : memref<8x32xf32, #tpu.memory_space<vmem>>, vector<8x32xf32>
      tpu.vector_store %arg16[%c0_64, %c0_65], %121 {strides = array<i32>} : memref<8x32xf32, #tpu.memory_space<vmem>>, vector<8x32xf32>,
    } else {
    }
    %c0_57 = arith.constant 0 : index
    %c0_58 = arith.constant 0 : index
    %115 = vector.load %arg16[%c0_57, %c0_58] : memref<8x32xf32, #tpu.memory_space<vmem>>, vector<8x32xf32>
    %116 = arith.addf %115, %111 : vector<8x32xf32>
    %c0_59 = arith.constant 0 : index
    %c0_60 = arith.constant 0 : index
    %117 = vector.load %arg16[%c0_59, %c0_60] : memref<8x32xf32, #tpu.memory_space<vmem>>, vector<8x32xf32>
    tpu.vector_store %arg16[%c0_59, %c0_60], %116 {strides = array<i32>} : memref<8x32xf32, #tpu.memory_space<vmem>>, vector<8x32xf32>,
    %c0_i32_61 = arith.constant 0 : i32
    %118 = arith.cmpi eq, %arg2, %c0_i32_61 : i32
    %119 = arith.extui %118 : i1 to i32
    %c0_i32_62 = arith.constant 0 : i32
    %120 = arith.cmpi ne, %119, %c0_i32_62 : i32
    scf.if %120 {
      %c0_63 = arith.constant 0 : index
      %c0_64 = arith.constant 0 : index
      %121 = vector.load %arg16[%c0_63, %c0_64] : memref<8x32xf32, #tpu.memory_space<vmem>>, vector<8x32xf32>
      %c0_65 = arith.constant 0 : index
      %c0_66 = arith.constant 0 : index
      %122 = vector.load %arg14[%c0_65, %c0_66] : memref<1x32xf32, #tpu.memory_space<vmem>>, vector<1x32xf32>
      %123 = vector.broadcast %122 : vector<1x32xf32> to vector<8x32xf32>
      %124 = arith.addf %121, %123 : vector<8x32xf32>
      %c0_67 = arith.constant 0 : index
      %c0_68 = arith.constant 0 : index
      %c0_69 = arith.constant 0 : index
      %125 = vector.load %arg15[%c0_67, %c0_68, %c0_69] : memref<1x8x32xf32, #tpu.memory_space<vmem>>, vector<1x8x32xf32>
      %126 = vector.shape_cast %125 : vector<1x8x32xf32> to vector<8x32xf32>
      %127 = vector.shape_cast %124 : vector<8x32xf32> to vector<1x8x32xf32>
      tpu.vector_store %arg15[%c0_67, %c0_68, %c0_69], %127 {strides = array<i32>} : memref<1x8x32xf32, #tpu.memory_space<vmem>>, vector<1x8x32xf32>,
    } else {
    }
    return
  }
  func.func @transform_0(%arg0: i32, %arg1: i32, %arg2: i32) -> (i32, i32, i32) {
    %c0_i32 = arith.constant 0 : i32
    %c0_i32_0 = arith.constant 0 : i32
    return %arg0, %arg1, %c0_i32 : i32, i32, i32
  }
  func.func @transform_1(%arg0: i32, %arg1: i32, %arg2: i32) -> (i32, i32, i32) {
    %c0_i32 = arith.constant 0 : i32
    %c0_i32_0 = arith.constant 0 : i32
    %c0_i32_1 = arith.constant 0 : i32
    return %arg0, %c0_i32, %c0_i32_0 : i32, i32, i32
  }
  func.func @transform_2(%arg0: i32, %arg1: i32, %arg2: i32) -> (i32, i32, i32) {
    %c0_i32 = arith.constant 0 : i32
    %c0_i32_0 = arith.constant 0 : i32
    %c0_i32_1 = arith.constant 0 : i32
    return %arg0, %c0_i32, %c0_i32_0 : i32, i32, i32
  }
  func.func @transform_3(%arg0: i32, %arg1: i32, %arg2: i32) -> (i32, i32, i32, i32) {
    %c0_i32 = arith.constant 0 : i32
    %c0_i32_0 = arith.constant 0 : i32
    return %arg0, %arg2, %arg1, %c0_i32 : i32, i32, i32, i32
  }
  func.func @transform_4(%arg0: i32, %arg1: i32, %arg2: i32) -> (i32, i32, i32) {
    %c0_i32 = arith.constant 0 : i32
    %c0_i32_0 = arith.constant 0 : i32
    %c0_i32_1 = arith.constant 0 : i32
    return %arg2, %c0_i32, %c0_i32_0 : i32, i32, i32
  }
  func.func @transform_5(%arg0: i32, %arg1: i32, %arg2: i32) -> (i32, i32, i32) {
    %c0_i32 = arith.constant 0 : i32
    %c0_i32_0 = arith.constant 0 : i32
    %c0_i32_1 = arith.constant 0 : i32
    return %arg2, %c0_i32, %c0_i32_0 : i32, i32, i32
  }
  func.func @transform_6(%arg0: i32, %arg1: i32, %arg2: i32) -> (i32, i32, i32) {
    %c0_i32 = arith.constant 0 : i32
    %c0_i32_0 = arith.constant 0 : i32
    %c0_i32_1 = arith.constant 0 : i32
    return %arg2, %c0_i32, %c0_i32_0 : i32, i32, i32
  }
  func.func @transform_7(%arg0: i32, %arg1: i32, %arg2: i32) -> (i32, i32, i32) {
    %c0_i32 = arith.constant 0 : i32
    %c0_i32_0 = arith.constant 0 : i32
    %c0_i32_1 = arith.constant 0 : i32
    return %arg2, %c0_i32, %c0_i32_0 : i32, i32, i32
  }
  func.func @transform_8(%arg0: i32, %arg1: i32, %arg2: i32) -> (i32, i32, i32) {
    %c0_i32 = arith.constant 0 : i32
    %c0_i32_0 = arith.constant 0 : i32
    %c0_i32_1 = arith.constant 0 : i32
    return %arg2, %c0_i32, %c0_i32_0 : i32, i32, i32
  }
  func.func @transform_9(%arg0: i32, %arg1: i32, %arg2: i32) -> (i32, i32, i32) {
    %c0_i32 = arith.constant 0 : i32
    %c0_i32_0 = arith.constant 0 : i32
    %c0_i32_1 = arith.constant 0 : i32
    return %arg2, %c0_i32, %c0_i32_0 : i32, i32, i32
  }
  func.func @transform_10(%arg0: i32, %arg1: i32, %arg2: i32) -> (i32, i32, i32) {
    %c0_i32 = arith.constant 0 : i32
    %c0_i32_0 = arith.constant 0 : i32
    %c0_i32_1 = arith.constant 0 : i32
    return %arg2, %c0_i32, %c0_i32_0 : i32, i32, i32
  }
  func.func @transform_11(%arg0: i32, %arg1: i32, %arg2: i32) -> (i32, i32) {
    %c0_i32 = arith.constant 0 : i32
    %c0_i32_0 = arith.constant 0 : i32
    %c0_i32_1 = arith.constant 0 : i32
    return %c0_i32, %c0_i32_0 : i32, i32
  }
  func.func @transform_12(%arg0: i32, %arg1: i32, %arg2: i32) -> (i32, i32, i32) {
    %c0_i32 = arith.constant 0 : i32
    %c0_i32_0 = arith.constant 0 : i32
    return %arg0, %arg1, %c0_i32 : i32, i32, i32
  }
}

</mosaic_0001>

<bundles_post_ra>
// kernel: tpu_custom_call.1
= control target key start
LH: loop header
LB: loop body
LE: loop exit
PB: predicated region body
PF: predicated region fallthrough
CT: control target
= control target key end

     0   :  { %s3141_s0 = inlined_call_operand.hbm [shape: f32[2,8,32], index: 0, kind: input, shape index: {}]   ;;  %s3142_s1 = inlined_call_operand.hbm [shape: f32[2,8,32], index: 1, kind: input, shape index: {}]   ;;  %s3143_s2 = inlined_call_operand.hbm [shape: f32[2,8,32], index: 2, kind: input, shape index: {}]   ;;  %s3144_s3 = inlined_call_operand.hbm [shape: f32[2,4,8,8], index: 3, kind: input, shape index: {}]   ;;  %s3145_s4 = inlined_call_operand.hbm [shape: f32[1,32,32], index: 4, kind: input, shape index: {}]   ;;  %s3146_s5 = inlined_call_operand.vmem [shape: f32[1,1,32], index: 5, kind: input, shape index: {}]   ;;  %s3147_s6 = inlined_call_operand.hbm [shape: f32[1,32,32], index: 6, kind: input, shape index: {}]   ;;  %s3148_s7 = inlined_call_operand.vmem [shape: f32[1,1,32], index: 7, kind: input, shape index: {}]   ;;  %s3149_s8 = inlined_call_operand.hbm [shape: f32[1,32,32], index: 8, kind: input, shape index: {}]   ;;  %s3150_s9 = inlined_call_operand.vmem [shape: f32[1,1,32], index: 9, kind: input, shape index: {}]   ;;  %s3151_s10 = inlined_call_operand.hbm [shape: f32[1,32,32], index: 10, kind: input, shape index: {}]   ;;  %s3152_s11 = inlined_call_operand.vmem [shape: f32[1,32], index: 11, kind: input, shape index: {}]   ;;  %s3153_s12 = inlined_call_operand.hbm [shape: f32[2,8,32], index: 12, kind: output, shape index: {}]  }
   0x1   :  { %3169 = sst [smem:[#allocation34_spill]] %s3141_s0 }
   0x2   :  { %3170 = sst [smem:[#allocation35_spill]] %s3142_s1 }
   0x3   :  { %3171 = sst [smem:[#allocation36_spill]] %s3145_s4 }
   0x4   :  { %3172 = sst [smem:[#allocation37_spill]] %s3147_s6 }
   0x5   :  { %3173 = sst [smem:[#allocation38_spill]] %s3149_s8 }
   0x6   :  { %3174 = sst [smem:[#allocation39_spill]] %s3150_s9 }
   0x7   :  { %3175 = sst [smem:[#allocation40_spill]] %s3152_s11 }
   0x8   :  { %3176 = sst [smem:[#allocation41_spill]] %s3153_s12 }
   0x9   :  { %17 = vsyncpa [#allocation6], 0 }
   0xa   :  { %19 = vsyncpa [#allocation6 + $0x1], 0 }
   0xb   :  { %20 = vsyncpa [#allocation9], 0 }
   0xc   :  { %22 = vsyncpa [#allocation9 + $0x1], 0 }
   0xd   :  { %23 = vsyncpa [#allocation12], 0 }
   0xe   :  { %25 = vsyncpa [#allocation12 + $0x1], 0 }
   0xf   :  { %26 = vsyncpa [#allocation15], 0 }
  0x10   :  { %27 = vsyncpa [#allocation18], 0 }
  0x11   :  { %28 = vsyncpa [#allocation7], 0 }
  0x12   :  { %30 = vsyncpa [#allocation7 + $0x1], 0  ;;  %s2745_s21 = smov 0   ;;  %s2747_s22 = smov 0  }
  0x13   :  { %s2749_s23 = smov 0   ;;  %s2751_s24 = smov 0  }
  0x14   :  { %s2753_s25 = smov 0   ;;  %s2755_s26 = smov 0  }
  0x15 LB: > { %3177 = sst [smem:[#allocation27_spill]] %s2639_s21  ;;  %s2776_s27 = sadd.s32 4294967295, %s2659_s26   ;;  %s2659_s26 = sphi %s2755_s26, %s36_s26   ;;  %s2655_s25 = sphi %s2753_s25, %s3222_s25   ;;  %s2651_s24 = sphi %s2751_s24, %s3221_s24   ;;  %s2647_s23 = sphi %s2749_s23, %s3217_s23   ;;  %s2643_s22 = sphi %s2747_s22, %s3220_s22   ;;  %s2639_s21 = sphi %s2745_s21, %s3219_s21  }
  0x16   : > { %3178 = sst [smem:[#allocation28_spill]] %s2647_s23  ;;  %s2022_s28 = sadd.s32 4294967294, %s2659_s26  }
  0x17   : > { %3179 = sst [smem:[#allocation29_spill]] %s2651_s24  ;;  %p77_p0 = scmp.ne.s32.totalorder %s2643_s22, %s2639_s21 }
  0x18   : > { %p3165_p1 = scmp.eq.s32.totalorder %s2776_s27, 0  ;;  %p388_p2 = scmp.eq.s32.totalorder %s2776_s27, 1 }
  0x19   : > { %p394_p3 = scmp.eq.s32.totalorder %s2022_s28, 1  ;;  %p2023_p5 = scmp.ge.s32.totalorder %s2659_s26, 1 }
  0x1a   : > { %p2785_p4 = por %p3165_p1, %p77_p0  ;;  %p401_p7 = scmp.lt.s32.totalorder %s2659_s26, 3 }
  0x1b   : > { %p2790_p6 = por %p394_p3, %p77_p0  ;;  %s2661_s14 = smov [#allocation13]  }
  0x1c   : > { %p2795_p8 = pnand %p2023_p5, %p401_p7  ;;  %s416_s15 = sshll.u32 %s2661_s14, 4  ;;  %s417_s15 = int_to_ptr.vmem [resolvable:$true] %s416_s15 }
  0x1d   : > { %s3181_s30 = scalar_select %p2790_p6, 1, 0 }
  0x1e   : > { %p2225_p9 = pneg %p2795_p8  ;;  %s2662_s17 = smov [#allocation14]  }
  0x1f   : > { %3182 = sst [smem:[#allocation30_spill]] %s3181_s30  ;;  %s438_s18 = sshll.u32 %s2662_s17, 4  ;;  %s439_s18 = int_to_ptr.vmem [resolvable:$true] %s438_s18 }
  0x20   : > { %p2804_p11 = pnand %p2225_p9, %p3165_p1  ;;  %s2354_s19 = scalar_lea.vmem %s417_s15, 512 }
  0x21   : > { %p2355_p13 = scmp.ne.s32.totalorder %s417_s15, %s2354_s19  ;;  %p2362_p5 = scmp.lt.s32.totalorder %s417_s15, %s417_s15 }
  0x22   : > { %p3166_p12 = pneg %p2804_p11  ;;  %p2363_p7 = scmp.lt.s32.totalorder %s2354_s19, %s2354_s19 }
  0x24   : > { %p2357_p0 = pnand %p2355_p13, %p3166_p12  ;;  %p2364_p10 = por %p2363_p7, %p2362_p5 }
  0x26   : > { %p2358_p3 = pneg %p2357_p0 }
  0x28   : > { %p2365_p9 = pnand %p2364_p10, %p2358_p3 }
  0x2a   : > { %2368 = shalt.err (!%p2365_p9)
}
  0x2b   : > { %s3156_s20 = smov 128   ;;  %s3158_s28 = smov 8  }
  0x2c   : > { %s3185_s4 = sld [smem:[#allocation36_spill]]  ;;  %s2380_s30 = scalar_lea.vmem %s439_s18, 512 }
  0x2d   : > { %p2381_p13 = scmp.ne.s32.totalorder %s439_s18, %s2380_s30  ;;  %p2388_p10 = scmp.lt.s32.totalorder %s439_s18, %s439_s18 }
  0x2e   : > { %p2389_p3 = scmp.lt.s32.totalorder %s2380_s30, %s2380_s30 }
  0x2f   : > { %p2383_p0 = pnand %p2381_p13, %p3166_p12 }
  0x30   : > { %p2390_p7 = por %p2389_p3, %p2388_p10 }
  0x31   : > { %p2384_p5 = pneg %p2383_p0 }
  0x32   : > { %2228 = dma.hbm_to_vmem [thread:$0]  (!%p2804_p11), %s3185_s4, 512, %s417_s15, [#allocation12], %s3156_s20, %s3156_s20, %s3158_s28  }
  0x33   : > { %p2391_p9 = pnand %p2390_p7, %p2384_p5 }
  0x35   : > { %2394 = shalt.err (!%p2391_p9)
}
  0x36   : > { %s3186_s6 = sld [smem:[#allocation37_spill]]  ;;  %s55_s30 = sadd.s32 1, %s2655_s25 }
  0x37   : > { %s64_s15 = sadd.s32 1, %s2647_s23  ;;  %p57_p13 = scmp.ge.s32.totalorder %s55_s30, 2 }
  0x38   : > { %p71_p0 = scmp.ne.s32.totalorder %s2647_s23, %s2643_s22  ;;  %p72_p5 = scmp.eq.s32.totalorder %s2659_s26, 0 }
  0x39   : > { %p2259_p10 = scmp.lt.s32.totalorder %s2659_s26, 2  ;;  %s3224_s30 = smov (%p57_p13, %s55_s30), 0 }
  0x3a   : > { %3187 = sst [smem:[#allocation31_spill]] %s3224_s30  ;;  %p73_p3 = por %p72_p5, %p71_p0 }
  0x3b   : > { %p2842_p7 = por %p388_p2, %p71_p0  ;;  %s59_s14 = ssub.s32 %s2655_s25, %s3224_s30 }
  0x3c   : > { %2231 = dma.hbm_to_vmem [thread:$0]  (!%p2804_p11), %s3186_s6, 512, %s439_s18, [#allocation15], %s3156_s20, %s3156_s20, %s3158_s28  }
  0x3d   : > { %s3188_s21 = scalar_select %p2842_p7, 1, 0 }
  0x3e   : > { %s2849_s18 = sand.u32 1, %s2647_s23   ;;  %p62_p9 = scmp.eq.s32.totalorder %s59_s14, 0 }
  0x3f   : > { %3189 = sst [smem:[#allocation32_spill]] %s3188_s21  ;;  %s2852_s17 = sshll.u32 %s2849_s18, 3 }
  0x40   : > { %s2855_s19 = sshll.u32 %s2655_s25, 7  ;;  %p2857_p13 = pnand %p2259_p10, %p73_p3 }
  0x41   : > { %s2862_s28 = scalar_select %p62_p9, %s2647_s23, %s64_s15  }
  0x42   : > { %s3167_s4 = sand.u32 1, %s2659_s26   ;;  %s3192_s1 = sld [smem:[#allocation35_spill]] }
  0x43   : > { %3191 = sst [smem:[#allocation33_spill]] %s2862_s28  ;;  %s522_s14 = scalar_lea.vmem [#allocation8], %s2852_s17 }
  0x44   : > { %s529_s11 = sshll.u32 %s522_s14, 4  ;;  %s2872_s21 = scalar_lea.sflag [#allocation9], %s3167_s4  ;;  %s530_s11 = int_to_ptr.vmem [resolvable:$true] %s529_s11 }
  0x45   : > { %p3168_p2 = pneg %p2857_p13  ;;  %s2408_s24 = scalar_lea.vmem %s530_s11, 128 }
  0x46   : > { %p2409_p0 = scmp.ne.s32.totalorder %s530_s11, %s2408_s24  ;;  %s2665_s15 = smov [#allocation8]  }
  0x47   : > { %s2413_s28 = sshll.u32 %s2665_s15, 4  ;;  %s2414_s28 = int_to_ptr.vmem [resolvable:$false] %s2413_s28 }
  0x48   : > { %s527_s12 = scalar_lea.hbm %s3192_s1, %s2855_s19  ;;  %p2411_p5 = pnand %p2409_p0, %p3168_p2 }
  0x49   : > { %s2415_s23 = scalar_lea.vmem %s2414_s28, 256  ;;  %p2416_p3 = scmp.lt.s32.totalorder %s530_s11, %s2414_s28 }
  0x4a   : > { %p2412_p10 = pneg %p2411_p5  ;;  %p2417_p9 = scmp.lt.s32.totalorder %s2415_s23, %s2408_s24 }
  0x4c   : > { %p2418_p1 = por %p2417_p9, %p2416_p3 }
  0x4e   : > { %p2419_p12 = pnand %p2418_p1, %p2412_p10 }
  0x50   : > { %2422 = shalt.err (!%p2419_p12)
}
  0x51   : > { %2244 = dma.hbm_to_vmem [thread:$0]  (!%p2857_p13), %s527_s12, 128, %s530_s11, %s2872_s21  }
  0x52   : > { %s2038_s6 = sshll.u32 %s2849_s18, 5  ;;  %s2666_s30 = smov [#allocation16]  }
  0x53   : > { %s460_s14 = sshll.u32 %s2666_s30, 4  ;;  %s558_s4 = scalar_lea.vmem [#allocation11], %s2038_s6  ;;  %s461_s14 = int_to_ptr.vmem [resolvable:$true] %s460_s14 }
  0x54   : > { %s568_s1 = sshll.u32 %s558_s4, 4  ;;  %s2434_s15 = scalar_lea.vmem %s461_s14, 512  ;;  %s2883_s1 = int_to_ptr.vmem [resolvable:$true] %s568_s1 }
  0x55   : > { %p2435_p0 = scmp.ne.s32.totalorder %s461_s14, %s2434_s15  ;;  %p3193_p5 = pneg %p2804_p11 }
  0x56   : > { %p2442_p10 = scmp.lt.s32.totalorder %s461_s14, %s461_s14  ;;  %p2443_p3 = scmp.lt.s32.totalorder %s2434_s15, %s2434_s15 }
  0x57   : > { %p2437_p1 = pnand %p2435_p0, %p3193_p5 }
  0x58   : > { %p2444_p9 = por %p2443_p3, %p2442_p10 }
  0x59   : > { %p2438_p12 = pneg %p2437_p1 }
  0x5b   : > { %p2445_p2 = pnand %p2444_p9, %p2438_p12 }
  0x5d   : > { %2448 = shalt.err (!%p2445_p2)
}
  0x5e   : > { %s3194_s11 = smov 8   ;;  %s3195_s12 = smov 128  }
  0x5f   : > { %s3196_s8 = sld [smem:[#allocation38_spill]]  ;;  %s2667_s24 = smov [#allocation17]  }
  0x60   : > { %s482_s28 = sshll.u32 %s2667_s24, 4  ;;  %s483_s28 = int_to_ptr.vmem [resolvable:$true] %s482_s28 }
  0x61   : > { %s2460_s6 = scalar_lea.vmem %s483_s28, 512  ;;  %p2468_p2 = scmp.lt.s32.totalorder %s483_s28, %s483_s28 }
  0x62   : > { %p2461_p0 = scmp.ne.s32.totalorder %s483_s28, %s2460_s6  ;;  %p2469_p10 = scmp.lt.s32.totalorder %s2460_s6, %s2460_s6 }
  0x64   : > { %p2463_p1 = pnand %p2461_p0, %p3193_p5  ;;  %p2470_p3 = por %p2469_p10, %p2468_p2 }
  0x65   : > { %2234 = dma.hbm_to_vmem [thread:$0]  (!%p2804_p11), %s3196_s8, 512, %s461_s14, [#allocation15], %s3195_s12, %s3195_s12, %s3194_s11  }
  0x66   : > { %p2464_p12 = pneg %p2463_p1 }
  0x68   : > { %p2471_p9 = pnand %p2470_p3, %p2464_p12 }
  0x6a   : > { %2474 = shalt.err (!%p2471_p9)
}
  0x6b   : > { %2237 = dma.hbm_to_vmem [thread:$0]  (!%p2804_p11), %s3151_s10, 512, %s483_s28, [#allocation18], %s3195_s12, %s3195_s12, %s3194_s11  }
  0x6c   : > { %s3197_s0 = sld [smem:[#allocation34_spill]]  ;;  %s503_s24 = scalar_lea.vmem [#allocation5], %s2852_s17 }
  0x6d   : > { %s511_s6 = sshll.u32 %s503_s24, 4  ;;  %s500_s8 = scalar_lea.sflag [#allocation6], %s2849_s18  ;;  %s512_s6 = int_to_ptr.vmem [resolvable:$true] %s511_s6 }
  0x6e   : > { %s2488_s16 = scalar_lea.vmem %s512_s6, 128  ;;  %p3198_p5 = pneg %p2857_p13 }
  0x6f   : > { %p2489_p0 = scmp.ne.s32.totalorder %s512_s6, %s2488_s16  ;;  %s2668_s30 = smov [#allocation5]  }
  0x70   : > { %s2493_s14 = sshll.u32 %s2668_s30, 4  ;;  %s2494_s14 = int_to_ptr.vmem [resolvable:$false] %s2493_s14 }
  0x71   : > { %p2491_p1 = pnand %p2489_p0, %p3198_p5  ;;  %s2495_s9 = scalar_lea.vmem %s2494_s14, 256 }
  0x72   : > { %s509_s23 = scalar_lea.hbm %s3197_s0, %s2855_s19  ;;  %p2496_p2 = scmp.lt.s32.totalorder %s512_s6, %s2494_s14 }
  0x73   : > { %p2492_p12 = pneg %p2491_p1  ;;  %p2497_p11 = scmp.lt.s32.totalorder %s2495_s9, %s2488_s16 }
  0x75   : > { %p2498_p10 = por %p2497_p11, %p2496_p2 }
  0x77   : > { %p2499_p3 = pnand %p2498_p10, %p2492_p12 }
  0x79   : > { %2502 = shalt.err (!%p2499_p3)
}
  0x7a   : > { %2241 = dma.hbm_to_vmem [thread:$0]  (!%p2857_p13), %s509_s23, 128, %s512_s6, %s500_s8  }
  0x7b   : > { %s545_s15 = scalar_lea.hbm %s3143_s2, %s2855_s19  ;;  %s540_s4 = scalar_lea.vmem [#allocation10], %s2852_s17 }
  0x7c   : > { %s547_s24 = sshll.u32 %s540_s4, 4  ;;  %s2078_s30 = sshll.u32 %s2655_s25, 9  ;;  %s548_s24 = int_to_ptr.vmem [resolvable:$true] %s547_s24 }
  0x7d   : > { %s2516_s14 = scalar_lea.vmem %s548_s24, 128  ;;  %p3199_p0 = pmov %p3198_p5 }
  0x7e   : > { %p2517_p9 = scmp.ne.s32.totalorder %s548_s24, %s2516_s14  ;;  %s2669_s9 = smov [#allocation10]  }
  0x7f   : > { %s2521_s16 = sshll.u32 %s2669_s9, 4  ;;  %s2522_s16 = int_to_ptr.vmem [resolvable:$false] %s2521_s16 }
  0x80   : > { %p2519_p5 = pnand %p2517_p9, %p3199_p0  ;;  %s2523_s0 = scalar_lea.vmem %s2522_s16, 256 }
  0x81   : > { %p2524_p12 = scmp.lt.s32.totalorder %s548_s24, %s2522_s16  ;;  %p2525_p2 = scmp.lt.s32.totalorder %s2523_s0, %s2516_s14 }
  0x82   : > { %p2520_p1 = pneg %p2519_p5 }
  0x83   : > { %p2526_p11 = por %p2525_p2, %p2524_p12 }
  0x85   : > { %p2527_p10 = pnand %p2526_p11, %p2520_p1 }
  0x87   : > { %2530 = shalt.err (!%p2527_p10)
}
  0x88   : > { %2247 = dma.hbm_to_vmem [thread:$0]  (!%p2857_p13), %s545_s15, 128, %s548_s24, %s2872_s21  }
  0x89   : > { %s567_s19 = scalar_lea.hbm %s3144_s3, %s2078_s30  ;;  %s3200_s23 = sand.u32 1, %s2659_s26  }
  0x8a   : > { %s555_s6 = scalar_lea.sflag [#allocation12], %s3200_s23  ;;  %s2544_s18 = scalar_lea.vmem %s2883_s1, 512 }
  0x8b   : > { %p2545_p3 = scmp.ne.s32.totalorder %s2883_s1, %s2544_s18  ;;  %p3201_p9 = pmov %p3199_p0 }
  0x8c   : > { %s2670_s0 = smov [#allocation11]  }
  0x8d   : > { %p2547_p0 = pnand %p2545_p3, %p3201_p9  ;;  %s2549_s28 = sshll.u32 %s2670_s0, 4  ;;  %s2550_s28 = int_to_ptr.vmem [resolvable:$false] %s2549_s28 }
  0x8e   : > { %s2551_s4 = scalar_lea.vmem %s2550_s28, 1024  ;;  %p2552_p1 = scmp.lt.s32.totalorder %s2883_s1, %s2550_s28 }
  0x8f   : > { %p2548_p5 = pneg %p2547_p0  ;;  %p2553_p12 = scmp.lt.s32.totalorder %s2551_s4, %s2544_s18 }
  0x91   : > { %p2554_p2 = por %p2553_p12, %p2552_p1 }
  0x93   : > { %p2555_p11 = pnand %p2554_p2, %p2548_p5 }
  0x95   : > { %2558 = shalt.err (!%p2555_p11)
}
  0x96   : > { %2250 = dma.hbm_to_vmem [thread:$0]  (!%p2857_p13), %s567_s19, 512, %s2883_s1, %s555_s6, %s3195_s12, %s3195_s12, %s3194_s11  }
  0x97   : > { %580 = sbr.rel (%p2795_p8) target bundleno = 1638 (0x666), region = 68  ;;  %s2950_s21 = sand.u32 (!%p2795_p8), 1, %s2643_s22  }
  0x98   : > { %s2953_s15 = sshll.u32 (!%p2795_p8), %s2950_s21, 3  ;;  %s583_s24 = scalar_lea.sflag (!%p2795_p8), [#allocation6], %s2950_s21 }
  0x99   : > { %s586_s30 = scalar_lea.vmem (!%p2795_p8), [#allocation5], %s2953_s15 }
  0x9c   : > { %2610 = dma.done.wait (%p2785_p4), %s583_s24, 128  }
  0x9d   : > { %2612 = vsyncadd (%p2785_p4), %s583_s24, 4294967168  ;;  %s591_s1 = sand.u32 1, %s2776_s27   ;;  %s595_s20 = scalar_lea.vmem [#allocation8], %s2953_s15 }
  0x9e   : > { %s592_s13 = scalar_lea.sflag [#allocation9], %s591_s1 }
  0x9f   : > { %2614 = dma.done.wait (%p2785_p4), %s592_s13, 256  }
  0xa0   : > { %2616 = vsyncadd (%p2785_p4), %s592_s13, 4294967040  ;;  %s2045_s11 = sshll.u32 %s2950_s21, 5  ;;  %s604_s12 = scalar_lea.vmem [#allocation10], %s2953_s15 }
  0xa1   : > { %s610_s14 = scalar_lea.sflag [#allocation12], %s591_s1  ;;  %s2969_s9 = scalar_lea.vmem [#allocation11], %s2045_s11 }
  0xa2   : > { %2618 = dma.done.wait (%p2785_p4), %s610_s14, 512  }
  0xa3   : > { %2620 = vsyncadd (%p2785_p4), %s610_s14, 4294966784  ;;  %p3202_p8 = scmp.eq.s32.totalorder %s2776_s27, 0 }
  0xa5   : > { %2622 = dma.done.wait (%p3202_p8), [#allocation12], 512   ;;  %p3203_p13 = pmov %p3202_p8 }
  0xa6   : > { %p3204_p10 = pmov %p3202_p8 }
  0xa7   : > { %2624 = vsyncadd (%p3203_p13), [#allocation12], 4294966784 }
  0xa8   : > { %2626 = dma.done.wait (%p3204_p10), [#allocation15], 1024   ;;  %p3205_p3 = pmov %p3202_p8 }
  0xaa   : > { %2628 = vsyncadd (%p3205_p3), [#allocation15], 4294966272  ;;  %p3206_p9 = pmov %p3205_p3 }
  0xab   : > { %p3207_p0 = pmov %p3205_p3 }
  0xac   : > { %2630 = dma.done.wait (%p3206_p9), [#allocation18], 512  }
  0xad   : > { %2632 = vsyncadd (%p3207_p0), [#allocation18], 4294966784  ;;  %vm720_vm0 = vcmask 261120   ;;  %v2671_v0 = vmov 0.0   ;;  %vm2672_vm1 = vmmov 0   ;;  %v712_v1 = vld [vmem:[#allocation14 + $0x18] sm:$0xff] }
  0xae   : > { %2115 = vmatprep.subr.mxu0 %v2671_v0  ;;  %2123 = vmatprep.mubr.msk.f32.mxu0 %vm2672_vm1, %v2671_v0  ;;  %1746 = vst.msk [vmem:[#allocation2] sm:$0xff] %vm720_vm0, %v2671_v0  ;;  %v711_v2 = vld [vmem:[#allocation14 + $0x10] sm:$0xff]  ;;  %v710_v3 = vld [vmem:[#allocation14 + $0x8] sm:$0xff]  ;;  %v709_v4 = vld [vmem:[#allocation14] sm:$0xff]  ;;  %vm977_vm2 = vcmask 64512   ;;  %s2673_s17 = smov 120  }
  0xaf   : > { %2126 = vmatprep.subr.mxu1 %v2671_v0  ;;  %2134 = vmatprep.mubr.msk.f32.mxu1 %vm2672_vm1, %v2671_v0  ;;  %v708_v5 = vld [vmem:[%s595_s20] sm:$0xff]  ;;  %v888_v6 = vld [vmem:[#allocation13 + $0x18] sm:$0xff]  ;;  %v887_v7 = vld [vmem:[#allocation13 + $0x10] sm:$0xff]  ;;  %s2674_s19 = smov 112   ;;  %s2675_s23 = smov 104   ;;  %vm1661_vm3 = vcmask 130048  }
  0xb0   : > { %2116 = vmatpush3.msra.mxu0 %v712_v1  ;;  %v886_v8 = vld [vmem:[#allocation13 + $0x8] sm:$0xff]  ;;  %v885_v9 = vld [vmem:[#allocation13] sm:$0xff]  ;;  %v884_v10 = vld [vmem:[%s586_s30] sm:$0xff]  ;;  %s3208_s0 = sld [smem:[#allocation39_spill]]  ;;  %s2676_s28 = smov 8   ;;  %vm1663_vm4 = vcmask 195584  }
  0xb1   : > { %2117 = vmatprep.subr.mxu0 %v2671_v0  ;;  %v798_v11 = vld [vmem:[#allocation16 + $0x18] sm:$0xff]  ;;  %v797_v12 = vld [vmem:[#allocation16 + $0x10] sm:$0xff]  ;;  %v796_v13 = vld [vmem:[#allocation16 + $0x8] sm:$0xff]  ;;  %s2677_s4 = smov 16   ;;  %s2678_s24 = smov 24  }
  0xb2   : > { %2118 = vmatpush3.msra.mxu0 %v711_v2  ;;  %2127 = vmatpush3.msra.mxu1 %v798_v11  ;;  %v795_v14 = vld [vmem:[#allocation16] sm:$0xff]  ;;  %v794_v15 = vld [vmem:[%s604_s12] sm:$0xff]  ;;  %v2060_v61 = vld [vmem:[%s2969_s9 + $0x8] sm:$0xff]  ;;  %s3209_s30 = sld [smem:[#allocation29_spill]]  ;;  %s693_s14 = scalar_lea.vmem [#allocation19], %s2953_s15 }
  0xb3   : > { %2119 = vmatprep.subr.mxu0 %v2671_v0  ;;  %2128 = vmatprep.subr.mxu1 %v2671_v0  ;;  %v2051_v16 = vld [vmem:[%s3148_s7] ss:$0 sm:$0xff]  ;;  %v976_v36 = vld [vmem:[%s2969_s9] sm:$0xff]  ;;  %v2064_v41 = vld [vmem:[%s2969_s9 + $0x10] sm:$0xff]  ;;  %s3211_s11 = sld [smem:[#allocation40_spill]] }
  0xb4   : > { %2120 = vmatpush3.msra.mxu0 %v710_v3  ;;  %2129 = vmatpush3.msra.mxu1 %v797_v12  ;;  %v2055_v20 = vld [vmem:[%s3146_s5] ss:$0 sm:$0xff]  ;;  %s3212_s16 = sld [smem:[#allocation41_spill]] }
  0xb5   : > { %2121 = vmatprep.subr.mxu0 %v2671_v0  ;;  %2130 = vmatprep.subr.mxu1 %v2671_v0  ;;  %v2068_v46 = vld [vmem:[%s2969_s9 + $0x18] sm:$0xff]  ;;  %s1778_s9 = sshll.u32 %s693_s14, 4  ;;  %s1779_s9 = int_to_ptr.vmem [resolvable:$true] %s1778_s9 }
  0xb6   : > { %2122 = vmatpush3.msra.mxu0 %v709_v4  ;;  %2131 = vmatpush3.msra.mxu1 %v796_v13  ;;  %v2053_v26 = vld [vmem:[%s3208_s0] ss:$0 sm:$0xff] }
  0xb7   : > { %2124 = vmatmul.mubr.msk.f32.vlgmr.msra.gmra.mxu0 %vm720_vm0, %v708_v5  ;;  %2137 = vmatprep.subr.mxu0 %v2671_v0 }
  0xb8   : > { %2138 = vmatpush3.msra.mxu0 %v888_v6  ;;  %2145 = vmatprep.mubr.msk.f32.mxu0 %vm2672_vm1, %v2671_v0  ;;  %s2075_s12 = sshll.u32 %s3209_s30, 7 }
  0xb9   : > { %2139 = vmatprep.subr.mxu0 %v2671_v0  ;;  %2132 = vmatprep.subr.mxu1 %v2671_v0 }
  0xba   : > { %2140 = vmatpush3.msra.mxu0 %v887_v7  ;;  %2133 = vmatpush3.msra.mxu1 %v795_v14  ;;  %s1776_s8 = scalar_lea.hbm %s3212_s16, %s2075_s12 }
  0xbb   : > { %2141 = vmatprep.subr.mxu0 %v2671_v0  ;;  %2135 = vmatmul.mubr.msk.f32.vlgmr.msra.gmra.mxu1 %vm720_vm0, %v794_v15 }
  0xbc   : > { %2142 = vmatpush3.msra.mxu0 %v886_v8  ;;  %2148 = vmatprep.subr.mxu1 %v2671_v0 }
  0xbd   : > { %2143 = vmatprep.subr.mxu0 %v2671_v0  ;;  %2150 = vmatprep.mubr.msk.f32.mxu1 %vm2672_vm1, %v2671_v0 }
  0xbe   : > { %2144 = vmatpush3.msra.mxu0 %v885_v9 }
  0xbf   : > { %2146 = vmatmul.mubr.msk.f32.vlgmr.msra.gmra.mxu0 %vm720_vm0, %v884_v10  ;;  %2168 = vmatprep.subr.mxu0 %v2671_v0 }
  0xc0   : > { %2170 = vmatprep.mubr.msk.f32.mxu0 %vm2672_vm1, %v2671_v0 }
 0x177   : > { %v790_v17 = vpop.f32.mrf.mxu0 }
 0x178   : > { %v791_v18 = vadd.f32 %v2051_v16, %v790_v17 }
 0x179   : > { %v2125_v19 = vpop.f32.mrf.mxu0 }
 0x17a   : > { %881 = vst.msk [vmem:[#allocation3] sm:$0xff] %vm720_vm0, %v791_v18 }
 0x17b   : > { %v875_v27 = vpop.f32.mrf.mxu1 }
 0x17c   : > { %v876_v28 = vadd.f32 %v2053_v26, %v875_v27 }
 0x17d   : > { %v2136_v29 = vpop.f32.mrf.mxu1 }
 0x17e   : > { %883 = vst.msk [vmem:[#allocation4] sm:$0xff] %vm720_vm0, %v876_v28  ;;  %v1668_v28 = vld [vmem:[#allocation17 + $0x18] sm:$0xff] }
 0x17f   : > { %v966_v21 = vpop.f32.mrf.mxu0 }
 0x180   : > { %v967_v22 = vadd.f32 %v2055_v20, %v966_v21 }
 0x181   : > { %v2147_v23 = vpop.f32.mrf.mxu0  ;;  %v973_v24 = vld [vmem:[#allocation3] sm:$0xff] }
 0x182   : > { %v970_v25 = vmul.f32 0.35355338, %v967_v22  ;;  %2149 = vmatpush3.xpose.msk.msra.mxu1 %vm977_vm2, %v973_v24 }
 0x183   : > { %2153 = vmatprep.subr.mxu1 %v2671_v0 }
 0x184   : > { %1142 = vrot.lane.b32.xlu1 %v970_v25, %s2673_s17 }
 0x185   : > { %2151 = vmatmul.mubr.msk.f32.vlgmr.msra.gmra.mxu1 %vm977_vm2, %v970_v25  ;;  %v975_v30 = vld [vmem:[#allocation4] sm:$0xff] }
 0x186   : > { %2155 = vmatprep.mubr.msk.f32.mxu1 %vm2672_vm1, %v2671_v0  ;;  %2154 = vmatpush3.msra.mxu1 %v975_v30 }
 0x187   : > { %2158 = vmatprep.subr.mxu1 %v2671_v0 }
 0x188   : > { %1314 = vrot.lane.b32.xlu1 %v973_v24, %s2674_s19 }
 0x18c   : > { %1312 = vrot.lane.b32.xlu1 %v970_v25, %s2674_s19 }
 0x190   : > { %1483 = vrot.lane.b32.xlu1 %v973_v24, %s2675_s23 }
 0x194   : > { %1481 = vrot.lane.b32.xlu1 %v970_v25, %s2675_s23 }
 0x1f6   : > { %v1143_v31 = vpop.permute.xlu1 %1142 }
 0x1fa   : > { %v1315_v32 = vpop.permute.xlu1 %1314 }
 0x1fb   : > { %2169 = vmatpush3.xpose.msk.msra.mxu0 %vm977_vm2, %v1315_v32  ;;  %v1665_v32 = vld [vmem:[#allocation17] sm:$0xff] }
 0x1fc   : > { %2178 = vmatprep.subr.mxu0 %v2671_v0 }
 0x1fe   : > { %v1313_v33 = vpop.permute.xlu1 %1312 }
 0x1ff   : > { %2171 = vmatmul.mubr.msk.f32.vlgmr.msra.gmra.mxu0 %vm977_vm2, %v1313_v33 }
 0x200   : > { %2180 = vmatprep.mubr.msk.f32.mxu0 %vm2672_vm1, %v2671_v0 }
 0x202   : > { %v1484_v34 = vpop.permute.xlu1 %1483 }
 0x203   : > { %2179 = vmatpush3.xpose.msk.msra.mxu0 %vm977_vm2, %v1484_v34 }
 0x204   : > { %2188 = vmatprep.subr.mxu0 %v2671_v0 }
 0x206   : > { %v1482_v35 = vpop.permute.xlu1 %1481 }
 0x207   : > { %2181 = vmatmul.mubr.msk.f32.vlgmr.msra.gmra.mxu0 %vm977_vm2, %v1482_v35 }
 0x208   : > { %2196 = vmatprep.mubr.msk.f32.mxu0 %vm2672_vm1, %v2671_v0  ;;  %2189 = vmatpush3.msra.mxu0 %v1668_v28 }
 0x209   : > { %2190 = vmatprep.subr.mxu0 %v2671_v0 }
 0x245   : > { %v1050_v37 = vpop.f32.mrf.mxu1 }
 0x246   : > { %v1051_v38 = vadd.f32 %v1050_v37, %v976_v36 }
 0x247   : > { %v2152_v39 = vpop.f32.mrf.mxu1 }
 0x248   : > { %v1054_v40 = vsel %vm977_vm2, %v1051_v38, -inf }
 0x249   : > { %1055 = vmax.xlane.f32.xlu0 %v1054_v40 }
 0x25f   : > { %1144 = vrot.lane.b32.xlu0 %v973_v24, %s2673_s17 }
 0x2bf   : > { %v1386_v42 = vpop.f32.mrf.mxu0 }
 0x2c0   : > { %v1387_v43 = vadd.f32 %v2064_v41, %v1386_v42 }
 0x2c1   : > { %v2172_v44 = vpop.f32.mrf.mxu0 }
 0x2c2   : > { %v1390_v45 = vsel %vm977_vm2, %v1387_v43, -inf }
 0x2c3   : > { %1391 = vmax.xlane.f32.xlu0 %v1390_v45 }
 0x2c7   : > { %v1555_v47 = vpop.f32.mrf.mxu0 }
 0x2c8   : > { %v1556_v48 = vadd.f32 %v2068_v46, %v1555_v47 }
 0x2c9   : > { %v2182_v49 = vpop.f32.mrf.mxu0 }
 0x2ca   : > { %v1559_v50 = vsel %vm977_vm2, %v1556_v48, -inf }
 0x2cb   : > { %1560 = vmax.xlane.f32.xlu1 %v1559_v50 }
 0x2d2   : > { %v1056_v51 = vpop.xlane.xlu0 %1055 }
 0x2d3   : > { %v1057_v52 = vmax.f32 %v1056_v51, -1e+30 }
 0x2d5   : > { %v1058_v53 = vsub.f32 %v1051_v38, %v1057_v52 }
 0x2d6   : > { %v1145_v56 = vpop.permute.xlu0 %1144 }
 0x2d7   : > { %v1059_v54 = vmul.f32 1.442695, %v1058_v53 }
 0x2d9   : > { %2327 = vpow2.f32 %v1059_v54  ;;  %1232 = vrot.lane.b32.xlu0 %v975_v30, %s2673_s17  ;;  %v1747_v54 = vld [vmem:[#allocation2] sm:$0xff]  ;;  %s1764_s17 = scalar_lea.sflag [#allocation7], %s2950_s21 }
 0x2e6   : > { %v2328_v55 = vpop.eup %2327 }
 0x2e7   : > { %2156 = vmatmul.mubr.msk.f32.vlgmr.msra.gmra.mxu1 %vm977_vm2, %v2328_v55  ;;  %v1061_v22 = vsel %vm977_vm2, %v2328_v55, 0.0 }
 0x2e8   : > { %2159 = vmatpush3.xpose.msk.msra.mxu1 %vm977_vm2, %v1145_v56  ;;  %2160 = vmatprep.mubr.msk.f32.mxu1 %vm2672_vm1, %v2671_v0 }
 0x2e9   : > { %2163 = vmatprep.subr.mxu1 %v2671_v0 }
 0x2eb   : > { %2161 = vmatmul.mubr.msk.f32.vlgmr.msra.gmra.mxu1 %vm977_vm2, %v1143_v31  ;;  %v1666_v31 = vld [vmem:[#allocation17 + $0x8] sm:$0xff] }
 0x2ec   : > { %2165 = vmatprep.mubr.msk.f32.mxu1 %vm2672_vm1, %v2671_v0 }
 0x34c   : > { %v1392_v57 = vpop.xlane.xlu0 %1391 }
 0x34d   : > { %v1393_v3 = vmax.f32 %v1392_v57, -1e+30 }
 0x34f   : > { %v1394_v4 = vsub.f32 %v1387_v43, %v1393_v3 }
 0x350   : > { %v1233_v58 = vpop.permute.xlu0 %1232 }
 0x351   : > { %2164 = vmatpush3.msra.mxu1 %v1233_v58  ;;  %v1395_v5 = vmul.f32 1.442695, %v1394_v4  ;;  %v2073_v58 = vld [vmem:[%s3211_s11] ss:$0 sm:$0xff] }
 0x352   : > { %2173 = vmatprep.subr.mxu1 %v2671_v0 }
 0x353   : > { %2329 = vpow2.f32 %v1395_v5 }
 0x354   : > { %v1561_v8 = vpop.xlane.xlu1 %1560 }
 0x355   : > { %v1562_v9 = vmax.f32 %v1561_v8, -1e+30 }
 0x357   : > { %v1563_v11 = vsub.f32 %v1556_v48, %v1562_v9 }
 0x359   : > { %v1564_v14 = vmul.f32 1.442695, %v1563_v11 }
 0x360   : > { %v2330_v6 = vpop.eup %2329 }
 0x361   : > { %v1397_v7 = vsel %vm977_vm2, %v2330_v6, 0.0 }
 0x3a7   : > { %v3071_v59 = vpop.f32.mrf.mxu1 }
 0x3a9   : > { %v2157_v60 = vpop.f32.mrf.mxu1 }
 0x3ab   : > { %v1216_v62 = vpop.f32.mrf.mxu1 }
 0x3ac   : > { %v1217_v63 = vadd.f32 %v2060_v61, %v1216_v62 }
 0x3ad   : > { %v2162_v1 = vpop.f32.mrf.mxu1 }
 0x3ae   : > { %v1220_v2 = vsel %vm977_vm2, %v1217_v63, -inf }
 0x3af   : > { %1221 = vmax.xlane.f32.xlu1 %v1220_v2 }
 0x3c0   : > { %1401 = vrot.lane.b32.xlu1 %v975_v30, %s2674_s19  ;;  %s2559_s19 = scalar_lea.vmem %s1779_s9, 128 }
 0x3c1   : > { %p2560_p4 = scmp.ne.s32.totalorder %s1779_s9, %s2559_s19 }
 0x3c3   : > { %p2561_p5 = pnand %p2560_p4, %p2842_p7 }
 0x3c4   : > { %1570 = vrot.lane.b32.xlu1 %v975_v30, %s2675_s23  ;;  %v1667_v30 = vld [vmem:[#allocation17 + $0x10] sm:$0xff]  ;;  %s2679_s23 = smov [#allocation19]  }
 0x3c5   : > { %2191 = vmatpush3.msra.mxu0 %v1667_v30  ;;  %p2562_p1 = pneg %p2561_p5  ;;  %s2563_s6 = sshll.u32 %s2679_s23, 4  ;;  %s2564_s6 = int_to_ptr.vmem [resolvable:$false] %s2563_s6 }
 0x3c6   : > { %2192 = vmatprep.subr.mxu0 %v2671_v0  ;;  %s2565_s15 = scalar_lea.vmem %s2564_s6, 256  ;;  %p2566_p12 = scmp.lt.s32.totalorder %s1779_s9, %s2564_s6 }
 0x3c7   : > { %2193 = vmatpush3.msra.mxu0 %v1666_v31  ;;  %p2567_p2 = scmp.lt.s32.totalorder %s2565_s15, %s2559_s19 }
 0x3c8   : > { %2194 = vmatprep.subr.mxu0 %v2671_v0 }
 0x3c9   : > { %2195 = vmatpush3.msra.mxu0 %v1665_v32  ;;  %p2568_p11 = por %p2567_p2, %p2566_p12 }
 0x3cb   : > { %p2569_p8 = pnand %p2568_p11, %p2562_p1 }
 0x3e8   : > { %1398 = vadd.xlane.f32.xlu1 %v1397_v7 }
 0x438   : > { %v1222_v10 = vpop.xlane.xlu1 %1221 }
 0x439   : > { %v1223_v12 = vmax.f32 %v1222_v10, -1e+30 }
 0x43b   : > { %v1224_v13 = vsub.f32 %v1217_v63, %v1223_v12 }
 0x43c   : > { %v1402_v16 = vpop.permute.xlu1 %1401 }
 0x43d   : > { %v1225_v15 = vmul.f32 1.442695, %v1224_v13 }
 0x43f   : > { %2331 = vpow2.f32 %v1225_v15 }
 0x440   : > { %2333 = vpow2.f32 %v1564_v14  ;;  %v1571_v20 = vpop.permute.xlu1 %1570 }
 0x44c   : > { %v2332_v17 = vpop.eup %2331 }
 0x44d   : > { %2166 = vmatmul.mubr.msk.f32.vlgmr.msra.gmra.mxu1 %vm977_vm2, %v2332_v17  ;;  %v1227_v18 = vsel %vm977_vm2, %v2332_v17, 0.0  ;;  %v2334_v19 = vpop.eup %2333 }
 0x44e   : > { %2174 = vmatpush3.msra.mxu1 %v1402_v16  ;;  %1228 = vadd.xlane.f32.xlu0 %v1227_v18  ;;  %v1566_v21 = vsel %vm977_vm2, %v2334_v19, 0.0 }
 0x44f   : > { %2175 = vmatprep.mubr.msk.f32.mxu1 %vm2672_vm1, %v2671_v0  ;;  %2183 = vmatprep.subr.mxu1 %v2671_v0 }
 0x451   : > { %2176 = vmatmul.mubr.msk.f32.vlgmr.msra.gmra.mxu1 %vm977_vm2, %v2330_v6 }
 0x452   : > { %2184 = vmatpush3.msra.mxu1 %v1571_v20  ;;  %1567 = vadd.xlane.f32.xlu0 %v1566_v21 }
 0x453   : > { %2185 = vmatprep.mubr.msk.f32.mxu1 %vm2672_vm1, %v2671_v0 }
 0x455   : > { %2186 = vmatmul.mubr.msk.f32.vlgmr.msra.gmra.mxu1 %vm977_vm2, %v2334_v19 }
 0x456   : > { %1062 = vadd.xlane.f32.xlu0 %v1061_v22 }
 0x471   : > { %v1399_v25 = vpop.xlane.xlu1 %1398 }
 0x472   : > { %v1400_v26 = vmax.f32 %v1399_v25, 1e-30 }
 0x4d7   : > { %v1229_v23 = vpop.xlane.xlu0 %1228 }
 0x4d8   : > { %v1230_v24 = vmax.f32 %v1229_v23, 1e-30 }
 0x4da   : > { %2335 = vrcp.f32 %v1230_v24 }
 0x4db   : > { %v1568_v27 = vpop.xlane.xlu0 %1567  ;;  %2337 = vrcp.f32 %v1400_v26 }
 0x4dc   : > { %v1569_v29 = vmax.f32 %v1568_v27, 1e-30 }
 0x4de   : > { %2339 = vrcp.f32 %v1569_v29 }
 0x4df   : > { %v1063_v0 = vpop.xlane.xlu0 %1062 }
 0x4e0   : > { %v1064_v45 = vmax.f32 %v1063_v0, 1e-30 }
 0x4e2   : > { %2341 = vrcp.f32 %v1064_v45 }
 0x4e7   : > { %v2336_v33 = vpop.eup %2335 }
 0x4e8   : > { %v2338_v37 = vpop.eup %2337 }
 0x4eb   : > { %v2340_v41 = vpop.eup %2339 }
 0x4ef   : > { %v2342_v46 = vpop.eup %2341 }
 0x4f0   : > { %v1139_v48 = vmul.f32 %v2342_v46, %v3071_v59 }
 0x50d   : > { %v1304_v34 = vpop.f32.mrf.mxu1 }
 0x50e   : > { %v1309_v35 = vmul.f32 %v2336_v33, %v1304_v34 }
 0x50f   : > { %v2167_v36 = vpop.f32.mrf.mxu1 }
 0x510   : > { %1649 = vrot.lane.b32.xlu1 %v1309_v35, %s2676_s28 }
 0x511   : > { %v1473_v38 = vpop.f32.mrf.mxu1 }
 0x512   : > { %v1478_v39 = vmul.f32 %v2338_v37, %v1473_v38 }
 0x513   : > { %v2177_v40 = vpop.f32.mrf.mxu1 }
 0x514   : > { %1653 = vrot.lane.b32.xlu0 %v1478_v39, %s2677_s4 }
 0x515   : > { %v1642_v42 = vpop.f32.mrf.mxu1 }
 0x516   : > { %v1647_v43 = vmul.f32 %v2340_v41, %v1642_v42 }
 0x517   : > { %v2187_v44 = vpop.f32.mrf.mxu1 }
 0x518   : > { %1657 = vrot.lane.b32.xlu1 %v1647_v43, %s2678_s24 }
 0x582   : > { %v1650_v47 = vpop.permute.xlu1 %1649 }
 0x583   : > { %v1660_v50 = vsel %vm977_vm2, %v1139_v48, %v1650_v47 }
 0x586   : > { %v1654_v49 = vpop.permute.xlu0 %1653 }
 0x587   : > { %v1662_v51 = vsel %vm1661_vm3, %v1660_v50, %v1654_v49 }
 0x58a   : > { %v1658_v52 = vpop.permute.xlu1 %1657 }
 0x58b   : > { %v1664_v53 = vsel %vm1663_vm4, %v1662_v51, %v1658_v52 }
 0x58c   : > { %2197 = vmatmul.mubr.msk.f32.vlgmr.msra.gmra.mxu0 %vm720_vm0, %v1664_v53 }
 0x64c   : > { %v1738_v55 = vpop.f32.mrf.mxu0 }
 0x64d   : > { %v1748_v56 = vadd.f32 %v1747_v54, %v1738_v55 }
 0x64e   : > { %v2198_v57 = vpop.f32.mrf.mxu0 }
 0x64f   : > { %1749 = vst.msk [vmem:[#allocation2] sm:$0xff] %vm720_vm0, %v1748_v56 }
 0x656   : > { %v1753_v59 = vld [vmem:[#allocation2] sm:$0xff] }
 0x657   : > { %v1761_v60 = vadd.f32 %v2073_v58, %v1753_v59 }
 0x659   : > { %1762 = vst.msk [vmem:[%s693_s14] sm:$0xff] %vm720_vm0, %v1761_v60 }
 0x65a   : > { %2572 = shalt.err (!%p2569_p8)
}
 0x65b   : > { %s2573_s18 = scalar_lea.hbm %s1776_s8, 128  ;;  %s2577_s28 = scalar_lea.hbm %s3212_s16, 256 }
 0x65c   : > { %p2574_p13 = scmp.ne.s32.totalorder %s1776_s8, %s2573_s18  ;;  %p2578_p9 = scmp.lt.s32.totalorder %s1776_s8, %s3212_s16 }
 0x65d   : > { %p2579_p0 = scmp.lt.s32.totalorder %s2577_s28, %s2573_s18 }
 0x65e   : > { %p2575_p10 = pnand %p2574_p13, %p2842_p7 }
 0x65f   : > { %p2580_p4 = por %p2579_p0, %p2578_p9 }
 0x660   : > { %p2576_p3 = pneg %p2575_p10 }
 0x662   : > { %p2581_p5 = pnand %p2580_p4, %p2576_p3 }
 0x664   : > { %2584 = shalt.err (!%p2581_p5)
}
 0x665   : > { %2223 = dma.vmem_to_hbm [thread:$0]  (%p2842_p7), %s1779_s9, 128, %s1776_s8, %s1764_s17  }
 0x666 PF: > { %s3213_s30 = sld [smem:[#allocation27_spill]]  ;;  %p3215_p1 = scmp.ge.s32.totalorder %s2659_s26, 2 }
 0x668   : > { %p2252_p12 = pnand %p3215_p1, %p2790_p6 }
 0x66a   : > { %p2253_p2 = pneg %p2252_p12 }
 0x66c   : > { %s1790_s20 = sand.u32 1, %s3213_s30  }
 0x66d   : > { %s1791_s11 = scalar_lea.sflag [#allocation7], %s1790_s20 }
 0x66e   : > { %2634 = dma.done.wait (%p2253_p2), %s1791_s11, 128  }
 0x66f   : > { %2636 = vsyncadd (%p2253_p2), %s1791_s11, 4294967168  ;;  %s36_s26 = sadd.s32 1, %s2659_s26   ;;  %s3216_s12 = sld [smem:[#allocation28_spill]] }
 0x670   : > { %p33_p11 = scmp.ge.s32.totalorder %s36_s26, 4   ;;  %s3217_s23 = sld [smem:[#allocation33_spill]] }
 0x671   : > { %s3218_s1 = sld [smem:[#allocation31_spill]]  ;;  %s3219_s21 = smov %s2643_s22 }
 0x672   : > { %s3221_s24 = smov %s2655_s25 }
 0x673   :  { %35 = sbr.rel (!%p33_p11) target bundleno = 21 (0x15), region = 198 }
 0x675   : > { %s3220_s22 = smov %s3216_s12 }
 0x677   : > { %s3222_s25 = smov %s3218_s1 }
 0x678   :  { %1796 = vsyncpa [#allocation6], 1 }
 0x679   :  { %1798 = vsyncpa [#allocation6 + $0x1], 1 }
 0x67a   :  { %1799 = vsyncpa [#allocation9], 1 }
 0x67b   :  { %1801 = vsyncpa [#allocation9 + $0x1], 1 }
 0x67c   :  { %1802 = vsyncpa [#allocation12], 1 }
 0x67d   :  { %1804 = vsyncpa [#allocation12 + $0x1], 1 }
 0x67e   :  { %1805 = vsyncpa [#allocation15], 1 }
 0x67f   :  { %1806 = vsyncpa [#allocation18], 1 }
 0x680   :  { %1807 = vsyncpa [#allocation7], 1 }
 0x681   :  { %1809 = vsyncpa [#allocation7 + $0x1], 1 }

</bundles_post_ra>
